<compile_context>
chip_gen: v6e
topology: v6e:2x2x1
jax: 0.10.0
libtpu: 0.0.40
codegen_flags: <defaults>
</compile_context>

<pallas_src>
import functools

import jax
import jax.numpy as jnp
from jax.experimental import pallas as pl
from jax.experimental.pallas import tpu as pltpu


def _block_mask_kernel(mask_ref, bm_ref, sum_ref, *, block_size):
    """Per-batch: block_mask = 1 - maxpool2d(mask, block_size, stride=1, pad=bs//2)."""
    _, H, W = mask_ref.shape
    pad = block_size // 2
    m = mask_ref[0].astype(jnp.float32)                      # (H, W), values in {0, 1}

    # Banded 0/1 matrices: a_h[i, a] = 1 iff input row a lies in the pooling
    # window of output row i; a_w[b, j] likewise for columns. window_sum =
    # a_h @ m @ a_w counts mask hits per window; since the mask is 0/1,
    # (window_sum >= 1) equals the window max. Border windows simply see fewer
    # terms, which matches the reference's padding semantics (mask >= 0).
    # Producing only the top-left HxW outputs implements the even-size crop.
    out_r = jax.lax.broadcasted_iota(jnp.int32, (H, H), 0)   # output row i
    in_r = jax.lax.broadcasted_iota(jnp.int32, (H, H), 1)    # input row a
    a_h = ((in_r >= out_r - pad) &
           (in_r <= out_r - pad + block_size - 1)).astype(jnp.float32)
    in_c = jax.lax.broadcasted_iota(jnp.int32, (W, W), 0)    # input col b
    out_c = jax.lax.broadcasted_iota(jnp.int32, (W, W), 1)   # output col j
    a_w = ((in_c >= out_c - pad) &
           (in_c <= out_c - pad + block_size - 1)).astype(jnp.float32)

    win = jnp.dot(a_h, jnp.dot(m, a_w, preferred_element_type=jnp.float32),
                  preferred_element_type=jnp.float32)        # (H, W) window sums
    bm = jnp.where(win >= 0.5, 0.0, 1.0)                     # 1 - pooled max
    bm_ref[0] = bm.astype(bm_ref.dtype)

    @pl.when(pl.program_id(0) == 0)
    def _():
        sum_ref[0, 0] = jnp.float32(0.0)
    sum_ref[0, 0] += jnp.sum(bm)


def _compute_block_mask(mask, block_size):
    B, H, W = mask.shape
    return pl.pallas_call(
        functools.partial(_block_mask_kernel, block_size=block_size),
        out_shape=(
            jax.ShapeDtypeStruct((B, H, W), mask.dtype),     # block mask
            jax.ShapeDtypeStruct((1, 1), jnp.float32),       # sum(block mask)
        ),
        grid=(B,),
        in_specs=[pl.BlockSpec((1, H, W), lambda b: (b, 0, 0))],
        out_specs=(
            pl.BlockSpec((1, H, W), lambda b: (b, 0, 0)),
            pl.BlockSpec((1, 1), lambda b: (0, 0),
                         memory_space=pltpu.MemorySpace.SMEM),
        ),
        compiler_params=pltpu.CompilerParams(
            dimension_semantics=("arbitrary",),              # sum accumulates over b
            vmem_limit_bytes=32 * 1024 * 1024,
        ),
    )(mask)


def _apply_kernel(scale_ref, x_ref, bm_ref, out_ref):
    scale = scale_ref[0, 0]
    # bm is 0/1 so bm*scale is exactly {0, scale}: one multiply per x element,
    # done in x's native dtype (no bulk f32 upcast for 16-bit inputs).
    bm_scaled = (bm_ref[...].astype(jnp.float32) * scale).astype(x_ref.dtype)  # (1, 1, HW)
    out_ref[...] = (x_ref[...] * bm_scaled).astype(out_ref.dtype)


def _pick_channel_tile(C, HW, itemsize, budget_bytes=2 << 20):
    """Largest channel tile dividing C whose (tc, HW) block stays under budget."""
    if C * HW * itemsize <= budget_bytes:
        return C
    best = C
    for tc in range(16, C, 16):              # multiple of 16 keeps the tiling legal
        if C % tc == 0 and tc * HW * itemsize <= budget_bytes:
            best = tc
    return best


def _apply(x3, bm3, scale):
    B, C, HW = x3.shape
    tc = _pick_channel_tile(C, HW, x3.dtype.itemsize)
    return pl.pallas_call(
        _apply_kernel,
        out_shape=jax.ShapeDtypeStruct((B, C, HW), x3.dtype),
        grid=(B, C // tc),
        in_specs=[
            pl.BlockSpec(memory_space=pltpu.MemorySpace.SMEM),        # scale (1, 1)
            pl.BlockSpec((1, tc, HW), lambda b, c: (b, c, 0)),        # x
            pl.BlockSpec((1, 1, HW), lambda b, c: (b, 0, 0)),         # bm (resident over c)
        ],
        out_specs=pl.BlockSpec((1, tc, HW), lambda b, c: (b, c, 0)),
        compiler_params=pltpu.CompilerParams(
            dimension_semantics=("parallel", "parallel"),
            vmem_limit_bytes=32 * 1024 * 1024,
        ),
    )(scale, x3, bm3)


def dropblock_forward(x, key, *, block_size, drop_rate=0.5, half=True, training=True):
    """DropBlock forward (training mode applies block dropout; eval returns x)."""
    assert x.ndim == 4, "Expected input with 4 dimensions (bsize, channels, height, width)"
    if (not training) or drop_rate == 0.0:
        return x

    B, C, H, W = x.shape
    gamma = drop_rate / (block_size ** 2)
    # bf16 is TPU-native 16-bit storage; mask values are exactly {0, 1} so this
    # is numerically identical to the reference's fp16 mask.
    mask_dtype = jnp.bfloat16 if half else jnp.float32
    # RNG is glue; bit stream differs from torch by design.
    mask = (jax.random.uniform(key, (B, H, W)) < gamma).astype(mask_dtype)

    bm, total = _compute_block_mask(mask, block_size)

    total = total.astype(jnp.float32)
    if half:
        # torch half path: block_mask.sum() is fp16 before the divide; numel
        # stays full precision (matches `out * numel / sum` promotion order).
        total = total.astype(jnp.float16).astype(jnp.float32)
    scale = (jnp.float32(B * H * W) / total).astype(jnp.float32)   # (1, 1)

    # Lane-dense layout for the elementwise apply: last dim is H*W, not W.
    out = _apply(x.reshape(B, C, H * W), bm.reshape(B, 1, H * W), scale)
    return out.reshape(B, C, H, W)


def _reference(x, mask, block_size, half):
    """Plain-JAX reference mirroring the PyTorch module semantics."""
    pad = block_size // 2
    m = mask.astype(jnp.float32)
    pooled = jax.lax.reduce_window(
        m, -jnp.inf, jax.lax.max,
        (1, block_size, block_size), (1, 1, 1),
        [(0, 0), (pad, pad), (pad, pad)],
    )
    if block_size % 2 == 0:
        pooled = pooled[:, :-1, :-1]
    bm = (1.0 - pooled).astype(mask.dtype)
    out = x * bm[:, None, :, :].astype(jnp.float32)
    total = jnp.sum(bm.astype(jnp.float32))
    if half:
        total = total.astype(jnp.float16).astype(jnp.float32)
    scale = jnp.float32(bm.size) / total
    return out * scale


if __name__ == "__main__":
    key = jax.random.PRNGKey(0)
    kx, km = jax.random.split(key)

    B, C, H, W = 2, 4, 16, 16
    block_size = 3
    drop_rate = 0.5
    half = True

    x = jax.random.normal(kx, (B, C, H, W), dtype=jnp.float32)

    out = dropblock_forward(x, km, block_size=block_size, drop_rate=drop_rate,
                            half=half, training=True)
    out = jax.block_until_ready(out)

    # Correctness check against a plain-JAX reference (same Bernoulli mask).
    gamma = drop_rate / block_size ** 2
    mask_ref = (jax.random.uniform(km, (B, H, W)) < gamma).astype(
        jnp.bfloat16 if half else jnp.float32)
    ref = _reference(x, mask_ref, block_size, half)
    assert out.shape == x.shape and out.dtype == x.dtype
    assert jnp.allclose(out, ref, rtol=1e-5, atol=1e-5), "mismatch vs reference"

    print("KERNEL_OK")
</pallas_src>

<mosaic_0001>
module attributes {stable_mosaic.version = 11 : i64} {
  func.func @_block_mask_kernel(%arg0: i32, %arg1: memref<1x16x16xbf16, #tpu.memory_space<vmem>>, %arg2: memref<1x16x16xbf16, #tpu.memory_space<vmem>>, %arg3: memref<1x1xf32, #tpu.memory_space<smem>>) attributes {dimension_semantics = [#tpu.dimension_semantics<arbitrary>], iteration_bounds = array<i64: 2>, scalar_prefetch = 0 : i64, scratch_operands = 0 : i64, tpu.core_type = #tpu.core_type<tc>, window_params = [{transform_indices = @transform_0, window_bounds = array<i64: 1, 16, 16>}, {transform_indices = @transform_1, window_bounds = array<i64: 1, 16, 16>}, {transform_indices = @transform_2, window_bounds = array<i64: 1, 1>}]} {
    %c0 = arith.constant 0 : index
    %c0_0 = arith.constant 0 : index
    %c0_1 = arith.constant 0 : index
    %0 = vector.load %arg1[%c0, %c0_0, %c0_1] : memref<1x16x16xbf16, #tpu.memory_space<vmem>>, vector<1x16x16xbf16>
    %1 = vector.shape_cast %0 : vector<1x16x16xbf16> to vector<16x16xbf16>
    %2 = arith.extf %1 : vector<16x16xbf16> to vector<16x16xf32>
    %3 = tpu.iota {dimensions = array<i32: 0>} : vector<16x16xi32>
    %4 = tpu.iota {dimensions = array<i32: 1>} : vector<16x16xi32>
    %c1_i32 = arith.constant 1 : i32
    %5 = vector.broadcast %c1_i32 : i32 to vector<16x16xi32>
    %6 = arith.subi %3, %5 : vector<16x16xi32>
    %7 = arith.cmpi sge, %4, %6 : vector<16x16xi32>
    %c1_i32_2 = arith.constant 1 : i32
    %8 = vector.broadcast %c1_i32_2 : i32 to vector<16x16xi32>
    %9 = arith.subi %3, %8 : vector<16x16xi32>
    %c3_i32 = arith.constant 3 : i32
    %10 = vector.broadcast %c3_i32 : i32 to vector<16x16xi32>
    %11 = arith.addi %9, %10 : vector<16x16xi32>
    %c1_i32_3 = arith.constant 1 : i32
    %12 = vector.broadcast %c1_i32_3 : i32 to vector<16x16xi32>
    %13 = arith.subi %11, %12 : vector<16x16xi32>
    %14 = arith.cmpi sle, %4, %13 : vector<16x16xi32>
    %15 = arith.andi %7, %14 : vector<16x16xi1>
    %16 = arith.extui %15 : vector<16x16xi1> to vector<16x16xi32>
    %17 = arith.sitofp %16 : vector<16x16xi32> to vector<16x16xf32>
    %18 = tpu.iota {dimensions = array<i32: 0>} : vector<16x16xi32>
    %19 = tpu.iota {dimensions = array<i32: 1>} : vector<16x16xi32>
    %c1_i32_4 = arith.constant 1 : i32
    %20 = vector.broadcast %c1_i32_4 : i32 to vector<16x16xi32>
    %21 = arith.subi %19, %20 : vector<16x16xi32>
    %22 = arith.cmpi sge, %18, %21 : vector<16x16xi32>
    %c1_i32_5 = arith.constant 1 : i32
    %23 = vector.broadcast %c1_i32_5 : i32 to vector<16x16xi32>
    %24 = arith.subi %19, %23 : vector<16x16xi32>
    %c3_i32_6 = arith.constant 3 : i32
    %25 = vector.broadcast %c3_i32_6 : i32 to vector<16x16xi32>
    %26 = arith.addi %24, %25 : vector<16x16xi32>
    %c1_i32_7 = arith.constant 1 : i32
    %27 = vector.broadcast %c1_i32_7 : i32 to vector<16x16xi32>
    %28 = arith.subi %26, %27 : vector<16x16xi32>
    %29 = arith.cmpi sle, %18, %28 : vector<16x16xi32>
    %30 = arith.andi %22, %29 : vector<16x16xi1>
    %31 = arith.extui %30 : vector<16x16xi1> to vector<16x16xi32>
    %32 = arith.sitofp %31 : vector<16x16xi32> to vector<16x16xf32>
    %cst = arith.constant dense<0.000000e+00> : vector<16x16xf32>
    %33 = tpu.matmul %2, %32, %cst {dimension_numbers = #tpu.dot_dimension_numbers<[1], [0], [0], [1], [0, 0, 1, 1], [], []>} : vector<16x16xf32>, vector<16x16xf32>, vector<16x16xf32> -> vector<16x16xf32>
    %cst_8 = arith.constant dense<0.000000e+00> : vector<16x16xf32>
    %34 = tpu.matmul %17, %33, %cst_8 {dimension_numbers = #tpu.dot_dimension_numbers<[1], [0], [0], [1], [0, 0, 1, 1], [], []>} : vector<16x16xf32>, vector<16x16xf32>, vector<16x16xf32> -> vector<16x16xf32>
    %cst_9 = arith.constant 5.000000e-01 : f32
    %35 = vector.broadcast %cst_9 : f32 to vector<16x16xf32>
    %36 = arith.cmpf oge, %34, %35 : vector<16x16xf32>
    %cst_10 = arith.constant 0.000000e+00 : f32
    %cst_11 = arith.constant 1.000000e+00 : f32
    %37 = vector.broadcast %cst_10 : f32 to vector<16x16xf32>
    %38 = vector.broadcast %cst_11 : f32 to vector<16x16xf32>
    %39 = arith.select %36, %37, %38 : vector<16x16xi1>, vector<16x16xf32>
    %40 = arith.truncf %39 : vector<16x16xf32> to vector<16x16xbf16>
    %c0_12 = arith.constant 0 : index
    %c0_13 = arith.constant 0 : index
    %c0_14 = arith.constant 0 : index
    %41 = vector.load %arg2[%c0_12, %c0_13, %c0_14] : memref<1x16x16xbf16, #tpu.memory_space<vmem>>, vector<1x16x16xbf16>
    %42 = vector.shape_cast %41 : vector<1x16x16xbf16> to vector<16x16xbf16>
    %43 = vector.shape_cast %40 : vector<16x16xbf16> to vector<1x16x16xbf16>
    tpu.vector_store %arg2[%c0_12, %c0_13, %c0_14], %43 {strides = array<i32>} : memref<1x16x16xbf16, #tpu.memory_space<vmem>>, vector<1x16x16xbf16>,
    %c0_i32 = arith.constant 0 : i32
    %44 = arith.cmpi eq, %arg0, %c0_i32 : i32
    %45 = arith.extui %44 : i1 to i32
    %c0_i32_15 = arith.constant 0 : i32
    %46 = arith.cmpi ne, %45, %c0_i32_15 : i32
    scf.if %46 {
      %cst_21 = arith.constant 0.000000e+00 : f32
      %c0_22 = arith.constant 0 : index
      %c0_23 = arith.constant 0 : index
      %54 = memref.load %arg3[%c0_22, %c0_23] : memref<1x1xf32, #tpu.memory_space<smem>>
      memref.store %cst_21, %arg3[%c0_22, %c0_23] : memref<1x1xf32, #tpu.memory_space<smem>>
    } else {
    }
    %c0_16 = arith.constant 0 : index
    %c0_17 = arith.constant 0 : index
    %47 = memref.load %arg3[%c0_16, %c0_17] : memref<1x1xf32, #tpu.memory_space<smem>>
    %48 = vector.shape_cast %39 : vector<16x16xf32> to vector<1x16x16xf32>
    %cst_18 = arith.constant dense<0.000000e+00> : vector<1xf32>
    %49 = vector.multi_reduction <add>, %48, %cst_18 [1, 2] : vector<1x16x16xf32> to vector<1xf32>
    %50 = vector.shape_cast %49 : vector<1xf32> to vector<1x1x1xf32>
    %51 = vector.extract %50[0, 0, 0] : f32 from vector<1x1x1xf32>
    %52 = arith.addf %47, %51 : f32
    %c0_19 = arith.constant 0 : index
    %c0_20 = arith.constant 0 : index
    %53 = memref.load %arg3[%c0_19, %c0_20] : memref<1x1xf32, #tpu.memory_space<smem>>
    memref.store %52, %arg3[%c0_19, %c0_20] : memref<1x1xf32, #tpu.memory_space<smem>>
    return
  }
  func.func @transform_0(%arg0: i32) -> (i32, i32, i32) {
    %c0_i32 = arith.constant 0 : i32
    %c0_i32_0 = arith.constant 0 : i32
    %c0_i32_1 = arith.constant 0 : i32
    return %arg0, %c0_i32, %c0_i32_0 : i32, i32, i32
  }
  func.func @transform_1(%arg0: i32) -> (i32, i32, i32) {
    %c0_i32 = arith.constant 0 : i32
    %c0_i32_0 = arith.constant 0 : i32
    %c0_i32_1 = arith.constant 0 : i32
    return %arg0, %c0_i32, %c0_i32_0 : i32, i32, i32
  }
  func.func @transform_2(%arg0: i32) -> (i32, i32) {
    %c0_i32 = arith.constant 0 : i32
    %c0_i32_0 = arith.constant 0 : i32
    %c0_i32_1 = arith.constant 0 : i32
    return %c0_i32, %c0_i32_0 : i32, i32
  }
}

</mosaic_0001>

<bundles_post_ra>
// kernel: tpu_custom_call.1
= control target key start
LH: loop header
LB: loop body
LE: loop exit
PB: predicated region body
PF: predicated region fallthrough
CT: control target
= control target key end

     0   :  { %8 = vsyncpa [#allocation3], 0  ;;  %s951_s0 = inlined_call_operand.hbm [shape: bf16[2,16,16], index: 0, kind: input, shape index: {}]   ;;  %s952_s1 = inlined_call_operand.hbm [shape: bf16[2,16,16], index: 1, kind: output, shape index: {0}]   ;;  %s953_s2 = inlined_call_operand.hbm [shape: f32[1,1], index: 2, kind: output, shape index: {1}]  }
   0x1   :  { %10 = vsyncpa [#allocation3 + $0x1], 0 }
   0x2   :  { %11 = vsyncpa [#allocation4], 0 }
   0x3   :  { %13 = vsyncpa [#allocation4 + $0x1], 0 }
   0x4   :  { %14 = vsyncpa [#allocation5], 0  ;;  %s772_s9 = smov 0   ;;  %s774_s10 = smov 0  }
   0x5   :  { %s776_s11 = smov 0   ;;  %s778_s12 = smov 0  }
   0x6 LB: > { %s793_s13 = sadd.s32 4294967295, %s745_s12   ;;  %s509_s14 = sadd.s32 4294967294, %s745_s12   ;;  %s745_s12 = sphi %s778_s12, %s974_s12   ;;  %s741_s11 = sphi %s776_s11, %s973_s11   ;;  %s737_s10 = sphi %s774_s10, %s972_s10   ;;  %s733_s9 = sphi %s772_s9, %s971_s9  }
   0x7   : > { %s797_s15 = sadd.s32 1, %s745_s12   ;;  %s27_s16 = sadd.s32 1, %s741_s11 }
   0x8   : > { %s24_s17 = ssub.s32 %s745_s12, %s797_s15  ;;  %p34_p0 = scmp.ne.s32.totalorder %s741_s11, %s737_s10 }
   0x9   : > { %p25_p1 = scmp.eq.s32.totalorder %s24_s17, 0  ;;  %p35_p2 = scmp.eq.s32.totalorder %s745_s12, 0 }
   0xa   : > { %p40_p3 = scmp.ne.s32.totalorder %s737_s10, %s733_s9  ;;  %p955_p4 = scmp.eq.s32.totalorder %s793_s13, 0 }
   0xb   : > { %s809_s18 = scalar_select %p25_p1, %s741_s11, %s27_s16  }
   0xc   : > { %p811_p5 = por %p35_p2, %p34_p0  ;;  %p817_p6 = por %p955_p4, %p40_p3 }
   0xd   : > { %p954_p7 = scmp.eq.s32.totalorder %s793_s13, 1  ;;  %p70_p8 = scmp.eq.s32.totalorder %s509_s14, 1 }
   0xe   : > { %s959_s20 = scalar_select %p817_p6, 1, 0 }
   0xf   : > { %p594_p10 = scmp.lt.s32.totalorder %s745_s12, 2  ;;  %p826_p11 = por %p954_p7, %p34_p0 }
  0x10   : > { %p830_p12 = por %p70_p8, %p40_p3  ;;  %s111_s23 = sand.u32 1, %s741_s11  }
  0x11   : > { %s960_s21 = scalar_select %p826_p11, 1, 0 }
  0x12   : > { %s961_s22 = scalar_select %p830_p12, 1, 0 }
  0x13   : > { %s544_s24 = sshll.u32 %s745_s12, 7  ;;  %s512_s25 = sshll.u32 %s111_s23, 3 }
  0x14   : > { %s839_s28 = scalar_lea.hbm %s951_s0, %s544_s24  ;;  %s115_s29 = scalar_lea.vmem [#allocation2], %s512_s25 }
  0x15   : > { %s122_s30 = sshll.u32 %s115_s29, 4  ;;  %p843_p13 = pnand %p594_p10, %p811_p5  ;;  %s847_s30 = int_to_ptr.vmem [resolvable:$true] %s122_s30 }
  0x16   : > { %s849_s4 = scalar_lea.sflag [#allocation3], %s111_s23  ;;  %s639_s5 = scalar_lea.hbm %s839_s28, 128 }
  0x17   : > { %p640_p0 = scmp.ne.s32.totalorder %s839_s28, %s639_s5  ;;  %p641_p1 = pneg %p843_p13 }
  0x18   : > { %s644_s8 = scalar_lea.hbm %s951_s0, 256  ;;  %p645_p5 = scmp.lt.s32.totalorder %s839_s28, %s951_s0 }
  0x19   : > { %p642_p2 = pnand %p641_p1, %p640_p0  ;;  %p646_p8 = scmp.lt.s32.totalorder %s644_s8, %s639_s5 }
  0x1b   : > { %p643_p3 = pneg %p642_p2  ;;  %p647_p10 = por %p646_p8, %p645_p5 }
  0x1d   : > { %p648_p9 = pnand %p647_p10, %p643_p3 }
  0x1f   : > { %651 = shalt.err (!%p648_p9)
}
  0x20   : > { %s652_s17 = scalar_lea.vmem %s847_s30, 128  ;;  %s747_s19 = smov [#allocation2]  }
  0x21   : > { %p653_p7 = scmp.ne.s32.totalorder %s847_s30, %s652_s17  ;;  %s657_s23 = sshll.u32 %s747_s19, 4  ;;  %s658_s23 = int_to_ptr.vmem [resolvable:$false] %s657_s23 }
  0x22   : > { %s659_s24 = scalar_lea.vmem %s658_s23, 256  ;;  %p660_p2 = scmp.lt.s32.totalorder %s847_s30, %s658_s23 }
  0x23   : > { %p655_p4 = pnand %p653_p7, %p641_p1  ;;  %p661_p12 = scmp.lt.s32.totalorder %s659_s24, %s652_s17 }
  0x25   : > { %p656_p0 = pneg %p655_p4  ;;  %p662_p11 = por %p661_p12, %p660_p2 }
  0x27   : > { %p663_p6 = pnand %p662_p11, %p656_p0 }
  0x29   : > { %666 = shalt.err (!%p663_p6)
}
  0x2a   : > { %s748_s25 = smov 64   ;;  %s749_s26 = smov 4  }
  0x2b   : > { %589 = dma.hbm_to_vmem [thread:$0]  (!%p843_p13), %s839_s28, 128, %s847_s30, %s849_s4, %s748_s25, %s748_s25, %s749_s26  }
  0x2c   : > { %p515_p4 = scmp.ge.s32.totalorder %s745_s12, 1  ;;  %p130_p7 = scmp.lt.s32.totalorder %s745_s12, 3 }
  0x2e   : > { %p131_p9 = pnand %p515_p4, %p130_p7 }
  0x2f   : > { %s873_s27 = sand.u32 (!%p131_p9), 1, %s737_s10   ;;  %p963_p6 = scmp.ne.s32.totalorder (!%p131_p9), %s959_s20, 0 }
  0x30   : > { %134 = sbr.rel (%p131_p9) target bundleno = 675 (0x2a3), region = 24  ;;  %s516_s29 = sshll.u32 (!%p131_p9), %s873_s27, 3 }
  0x31   : > { %s137_s5 = scalar_lea.sflag (!%p131_p9), [#allocation3], %s873_s27  ;;  %s140_s6 = scalar_lea.vmem (!%p131_p9), [#allocation2], %s516_s29 }
  0x35   : > { %720 = dma.done.wait (%p963_p6), %s137_s5, 128  }
  0x36   : > { %722 = vsyncadd (%p963_p6), %s137_s5, 4294967168  ;;  %v165_v0 = vlaneseq  ;;  %v549_v6 = vld [vmem:[%s140_s6] sm:$0xff]   ;;  %vm199_vm0 = vcmask 130048   ;;  %v750_v9 = vmov 1.0   ;;  %v751_v14 = vmov 0.0   ;;  %s158_s20 = scalar_lea.vmem [#allocation6], %s516_s29 }
  0x37   : > { %v550_v8 = vunpack.c.l.bf16 %v549_v6  ;;  %v551_v10 = vunpack.c.h.bf16 %v549_v6  ;;  %vm374_vm14 = vcmask 125952   ;;  %s752_s28 = smov 0.0   ;;  %p964_p11 = scmp.eq.s32.totalorder %s793_s13, 0 }
  0x38   : > { %v166_v1 = vshrl.u32 %v165_v0, 7  ;;  %v169_v2 = vand.u32 127, %v165_v0  ;;  %s547_s30 = sshll.u32 %s793_s13, 7  ;;  %s413_s8 = sshll.u32 %s158_s20, 4  ;;  %s899_s8 = int_to_ptr.vmem [resolvable:$true] %s413_s8 }
  0x39   : > { %564 = vmatprep.mubr.msk.f32.mxu0 %vm199_vm0, %v550_v8  ;;  %579 = sst [smem:[#allocation7]] (%p964_p11), %s752_s28  ;;  %s897_s7 = scalar_lea.hbm %s952_s1, %s547_s30 }
  0x3a   : > { %v167_v3 = vadd.s32 8, %v166_v1  ;;  %v524_v4 = vadd.s32 4294967295, %v169_v2  ;;  %v518_v11 = vadd.s32 4294967295, %v166_v1  ;;  %s400_s14 = scalar_lea.sflag [#allocation4], %s873_s27  ;;  %s667_s16 = scalar_lea.vmem %s899_s8, 128 }
  0x3b   : > { %p668_p12 = scmp.ne.s32.totalorder %s899_s8, %s667_s16  ;;  %p965_p13 = scmp.ne.s32.totalorder %s960_s21, 0 }
  0x3c   : > { %v189_v5 = vadd.s32 3, %v524_v4  ;;  %vm188_vm1 = vcmp.ge.s32.totalorder %v167_v3, %v524_v4  ;;  %vm187_vm2 = vcmp.ge.s32.totalorder %v166_v1, %v524_v4  ;;  %v174_v12 = vadd.s32 3, %v518_v11  ;;  %s753_s17 = smov [#allocation6]  }
  0x3d   : > { %vm172_vm7 = vcmp.ge.s32.totalorder %v169_v2, %v518_v11  ;;  %v519_v16 = vadd.s32 4294967295, %v167_v3  ;;  %p669_p1 = pnand %p668_p12, %p965_p13  ;;  %s671_s19 = sshll.u32 %s753_s17, 4  ;;  %s672_s19 = int_to_ptr.vmem [resolvable:$false] %s671_s19 }
  0x3e   : > { %v525_v7 = vadd.s32 4294967295, %v189_v5  ;;  %v520_v13 = vadd.s32 4294967295, %v174_v12  ;;  %s673_s23 = scalar_lea.vmem %s672_s19, 256  ;;  %p674_p5 = scmp.lt.s32.totalorder %s899_s8, %s672_s19 }
  0x3f   : > { %v175_v17 = vadd.s32 3, %v519_v16  ;;  %vm173_vm10 = vcmp.ge.s32.totalorder %v169_v2, %v519_v16  ;;  %p670_p3 = pneg %p669_p1  ;;  %p675_p8 = scmp.lt.s32.totalorder %s673_s23, %s667_s16 }
  0x40   : > { %vm192_vm3 = vcmp.le.s32.totalorder %v167_v3, %v525_v7  ;;  %vm191_vm4 = vcmp.le.s32.totalorder %v166_v1, %v525_v7  ;;  %vm178_vm8 = vcmp.le.s32.totalorder %v169_v2, %v520_v13 }
  0x41   : > { %vm194_vm5 = vmand %vm188_vm1, %vm192_vm3  ;;  %v521_v18 = vadd.s32 4294967295, %v175_v17  ;;  %p676_p10 = por %p675_p8, %p674_p5 }
  0x42   : > { %560 = vmatprep.subr.msk.mxu0 %vm194_vm5, %v750_v9  ;;  %vm193_vm6 = vmand %vm187_vm2, %vm191_vm4 }
  0x43   : > { %561 = vmatpush3.msk.msra.mxu0 %vm194_vm5, %v750_v9  ;;  %vm180_vm9 = vmand %vm172_vm7, %vm178_vm8  ;;  %vm179_vm11 = vcmp.le.s32.totalorder %v169_v2, %v521_v18  ;;  %p677_p0 = pnand %p676_p10, %p670_p3 }
  0x44   : > { %562 = vmatprep.subr.msk.mxu0 %vm193_vm6, %v750_v9  ;;  %v522_v15 = vsel %vm180_vm9, 1.0, %v751_v14  ;;  %vm181_vm12 = vmand %vm173_vm10, %vm179_vm11 }
  0x45   : > { %563 = vmatpush3.msk.msra.mxu0 %vm193_vm6, %v750_v9  ;;  %571 = vmatprep.mubr.msk.f32.mxu1 %vm199_vm0, %v522_v15  ;;  %v523_v21 = vsel %vm181_vm12, 1.0, %v751_v14 }
  0x46   : > { %565 = vmatmul.mubr.msk.f32.vlgmr.msra.gmra.mxu0 %vm199_vm0, %v551_v10 }
 0x106   : > { %v566_v19 = vpop.f32.mrf.mxu0 }
 0x107   : > { %567 = vmatprep.subr.mxu1 %v566_v19 }
 0x108   : > { %v272_v20 = vpop.f32.mrf.mxu0  ;;  %568 = vmatpush3.msra.mxu1 %v566_v19 }
 0x109   : > { %569 = vmatprep.subr.mxu1 %v272_v20 }
 0x10a   : > { %570 = vmatpush3.msra.mxu1 %v272_v20 }
 0x10b   : > { %572 = vmatmul.mubr.msk.f32.vlgmr.msra.gmra.mxu1 %vm199_vm0, %v523_v21 }
 0x1cb   : > { %v573_v22 = vpop.f32.mrf.mxu1 }
 0x1cc   : > { %vm363_vm13 = vcmp.ge.f32.partialorder %v573_v22, 0.5 }
 0x1cd   : > { %v365_v23 = vsel %vm363_vm13, 0.0, %v750_v9  ;;  %v353_v24 = vpop.f32.mrf.mxu1 }
 0x1ce   : > { %v546_v25 = vpack.c.bf16 %v365_v23, %v365_v23  ;;  %vm362_vm15 = vcmp.ge.f32.partialorder %v353_v24, 0.5  ;;  %v385_v29 = vsel %vm199_vm0, %v365_v23, 0.0 }
 0x1cf   : > { %v364_v26 = vsel %vm362_vm15, 0.0, %v750_v9 }
 0x1d0   : > { %376 = vst.msk [vmem:[%s158_s20 + $0x4] sm:$0xf] %vm374_vm14, %v546_v25  ;;  %v545_v27 = vpack.c.bf16 %v364_v26, %v364_v26  ;;  %v384_v28 = vsel %vm199_vm0, %v364_v26, 0.0 }
 0x1d1   : > { %v386_v30 = vadd.f32 %v385_v29, %v384_v28 }
 0x1d2   : > { %375 = vst.msk [vmem:[%s158_s20] sm:$0xf] %vm374_vm14, %v545_v27 }
 0x1d3   : > { %387 = vadd.xlane.f32.xlu0 %v386_v30 }
 0x1d4   : > { %680 = shalt.err (!%p677_p0)
}
 0x1d5   : > { %s681_s24 = scalar_lea.hbm %s897_s7, 128  ;;  %s685_s29 = scalar_lea.hbm %s952_s1, 256 }
 0x1d6   : > { %p682_p2 = scmp.ne.s32.totalorder %s897_s7, %s681_s24  ;;  %p686_p9 = scmp.lt.s32.totalorder %s897_s7, %s952_s1 }
 0x1d7   : > { %p687_p6 = scmp.lt.s32.totalorder %s685_s29, %s681_s24 }
 0x1d8   : > { %p683_p4 = pnand %p682_p2, %p965_p13 }
 0x1d9   : > { %p688_p11 = por %p687_p6, %p686_p9 }
 0x1da   : > { %p684_p7 = pneg %p683_p4 }
 0x1dc   : > { %p689_p12 = pnand %p688_p11, %p684_p7 }
 0x1de   : > { %692 = shalt.err (!%p689_p12)
}
 0x1df   : > { %s754_s20 = smov 64   ;;  %s755_s28 = smov 4  }
 0x1e0   : > { %580 = dma.vmem_to_hbm [thread:$0]  (%p965_p13), %s899_s8, 128, %s897_s7, %s400_s14, %s754_s20, %s754_s20, %s755_s28  }
 0x1e1   : > { %s383_s30 = sld [smem:[#allocation7]]  ;;  %s756_s16 = smov [#allocation7]  }
 0x1e2   : > { %p966_p1 = scmp.eq.s32.totalorder %s793_s13, 1 }
 0x1e4   : > { %p967_p3 = pmov %p966_p1 }
 0x25c   : > { %v388_v31 = vpop.xlane.xlu0 %387 }
 0x25d   : > { %v389_v32 = vrot.slane %v388_v31, 4 }
 0x25f   : > { %v390_v33 = vadd.f32 %v389_v32, %v388_v31 }
 0x261   : > { %v391_v34 = vrot.slane %v390_v33, 2 }
 0x263   : > { %v392_v35 = vadd.f32 %v391_v34, %v390_v33 }
 0x265   : > { %v393_v36 = vrot.slane %v392_v35, 1 }
 0x267   : > { %v394_v37 = vadd.f32 %v393_v36, %v392_v35 }
 0x269   : > { %574 = vpush %v394_v37 }
 0x29a   : > { %s575_s3 = spop %574 }
 0x29b   : > { %s396_s4 = sadd.f32 %s575_s3, %s383_s30 }
 0x29d   : > { %398 = sst [smem:[#allocation7]] %s396_s4 }
 0x29e   : > { %582 = dma.smem_to_hbm (%p966_p1), %s756_s16, 16, %s953_s2, [#allocation5]  }
 0x29f   : > { %724 = dma.done.wait (%p967_p3), [#allocation5], 16   ;;  %p968_p13 = pmov %p966_p1 }
 0x2a1   : > { %726 = vsyncadd (%p968_p13), [#allocation5], 4294967280 }
 0x2a2   : > { %433 = sfence }
 0x2a3 PF: > { %s442_s21 = sand.u32 1, %s733_s9   ;;  %p969_p5 = scmp.ne.s32.totalorder %s961_s22, 0 }
 0x2a4   : > { %p970_p8 = scmp.ge.s32.totalorder %s745_s12, 2  ;;  %s443_s27 = scalar_lea.sflag [#allocation4], %s442_s21 }
 0x2a6   : > { %p591_p10 = pnand %p970_p8, %p969_p5 }
 0x2a8   : > { %p592_p0 = pneg %p591_p10 }
 0x2aa   : > { %728 = dma.done.wait (%p592_p0), %s443_s27, 128  }
 0x2ab   : > { %730 = vsyncadd (%p592_p0), %s443_s27, 4294967168  ;;  %p17_p2 = scmp.ge.s32.totalorder %s797_s15, 4   ;;  %s971_s9 = smov %s737_s10 }
 0x2ac   : > { %s972_s10 = smov %s741_s11  ;;  %s973_s11 = smov %s809_s18 }
 0x2ad   : > { %s974_s12 = smov %s797_s15  ;;  %19 = sbr.rel (!%p17_p2) target bundleno = 6 (0x6), region = 84 }
 0x2b2   :  { %448 = vsyncpa [#allocation3], 1 }
 0x2b3   :  { %450 = vsyncpa [#allocation3 + $0x1], 1 }
 0x2b4   :  { %451 = vsyncpa [#allocation4], 1 }
 0x2b5   :  { %453 = vsyncpa [#allocation4 + $0x1], 1 }
 0x2b6   :  { %454 = vsyncpa [#allocation5], 1 }
 0x2b7   :  { %456 = vsyncpa [#allocation5 + $0x1], 1 }

</bundles_post_ra>
